<compile_context>
chip_gen: v7x
topology: tpu7x:2x2x1
jax: 0.10.0
libtpu: 0.0.40
codegen_flags: <defaults>
</compile_context>

<pallas_src>
import functools

import jax
import jax.numpy as jnp
from jax import lax
from jax.experimental import pallas as pl
from jax.experimental.pallas import tpu as pltpu

SMALL_ERR = 1e-6          # hp.general.small_err
COS_EPS = 1e-8            # F.cosine_similarity default eps
COS_EPS_SQ = COS_EPS * COS_EPS


def _ge2e_loss_kernel(n_speakers, m_utter, w_ref, b_ref, emb_ref, loss_ref):
    """One (N, M, D) group per grid step.  emb_ref block: (1, N*M, D) in VMEM."""
    N, M = n_speakers, m_utter
    NM = N * M
    # At these sizes (a few KB) a single live value is fine; at >~100-200 KB re-read
    # emb_ref[...] per use site instead (see review note).
    emb = emb_ref[0]                         # (N*M, D) f32; row r = (speaker r//M, utt r%M)
    w = w_ref[0]
    b = b_ref[0]

    # ---- speaker-membership masks (2-D only; no integer division) ----------------------
    # same_mask[r, j]  <=>  speaker(r) == j
    row = lax.broadcasted_iota(jnp.int32, (NM, N), 0)
    col = lax.broadcasted_iota(jnp.int32, (NM, N), 1)
    t = row - col * M
    same_mask = (t >= 0) & (t < M)                                       # (N*M, N) bool

    # transposed indicator built directly in (N, N*M) layout so the first matmul is a
    # plain lhs-lastdim x rhs-firstdim contraction (no lhs transpose inserted by Mosaic).
    jrow = lax.broadcasted_iota(jnp.int32, (N, NM), 0)
    rcol = lax.broadcasted_iota(jnp.int32, (N, NM), 1)
    tT = rcol - jrow * M
    sel_T = ((tT >= 0) & (tT < M)).astype(jnp.float32)                   # (N, N*M)

    # ---- per-speaker sums and embedding x sum dot products ------------------------------
    # Un-normalized centroids: the 1/M scale is folded into the reciprocal norms below, so
    # no (N, D) VPU multiply sits between the two MXU pushes.
    sum_c = lax.dot_general(sel_T, emb, (((1,), (0,)), ((), ())),
                            preferred_element_type=jnp.float32)          # (N, D)

    # dot_sum[r, j] = <emb[r], sum_c[j]>.  The RHS-lastdim contraction on this tiny (N, D)
    # operand is left to Mosaic: an explicit transpose would sit on the same serial chain.
    dot_sum = lax.dot_general(emb, sum_c, (((1,), (1,)), ((), ())),
                              preferred_element_type=jnp.float32)        # (N*M, N)

    # ---- per-row / per-speaker squared norms (2-D lane reduces) -------------------------
    e_sq = jnp.sum(emb * emb, axis=1, keepdims=True)                     # (N*M, 1)
    s_sq = jnp.sum(sum_c * sum_c, axis=1)                                # (N,)   ||sum_c||^2

    # own-speaker stats taken straight from the dot matrix:
    d_sum_same = jnp.sum(jnp.where(same_mask, dot_sum, 0.0),
                         axis=1, keepdims=True)                          # <e_r, sum_c[spk(r)]>
    s_sq_same = jnp.sum(jnp.where(same_mask, s_sq[None, :], 0.0),
                        axis=1, keepdims=True)                           # ||sum_c[spk(r)]||^2

    # leave-one-out centroid u_r = (sum_c[spk(r)] - e_r)/(M-1), expanded algebraically:
    inv_m1 = 1.0 / (M - 1)
    dot_same = (d_sum_same - e_sq) * inv_m1                              # <e_r, u_r>
    uc_sq = (s_sq_same - 2.0 * d_sum_same + e_sq) * (inv_m1 * inv_m1)    # ||u_r||^2

    # ---- hoisted reciprocal norms: rsqrt(max(x, eps^2)) == 1 / max(||.||, eps) exactly --
    inv_e = lax.rsqrt(jnp.maximum(e_sq, COS_EPS_SQ))                     # (N*M, 1)
    inv_uc = lax.rsqrt(jnp.maximum(uc_sq, COS_EPS_SQ))                   # (N*M, 1)
    # cos_diff = (dot_sum/M) / (max(||e||,eps) * max(||sum_c||/M, eps))
    #          =  dot_sum     / (max(||e||,eps) * max(||sum_c||, M*eps))   -- fold 1/M here
    inv_sc = lax.rsqrt(jnp.maximum(s_sq, (M * COS_EPS) ** 2))            # (N,)

    cos_same = dot_same * inv_e * inv_uc                                 # (N*M, 1)
    cos_diff = dot_sum * inv_e * inv_sc[None, :]                         # (N*M, N), VPU muls only
    cos_all = jnp.where(same_mask, cos_same, cos_diff)                   # own-speaker column swap

    sim = w * (cos_all + SMALL_ERR) + b                                  # (N*M, N)
    pos = w * (cos_same + SMALL_ERR) + b                                 # (N*M, 1) == diag of sim

    # max-stabilized, exactly-equivalent form of log(sum_j exp(sim) + SMALL_ERR)
    m_row = jnp.max(sim, axis=1, keepdims=True)
    neg = m_row + jnp.log(jnp.sum(jnp.exp(sim - m_row), axis=1, keepdims=True)
                          + SMALL_ERR * jnp.exp(-m_row))                 # (N*M, 1)

    loss_ref[0, 0] = jnp.sum(neg - pos)                                  # per-group scalar -> SMEM


def ge2e_loss_batched(embeddings, w=10.0, b=-5.0):
    """embeddings: (G, N_speakers, M_utterances, D) -> (G,) per-group GE2E losses.

    One group per grid step; the grid axis is 'parallel' (v7x megacore, DMA/compute
    overlap on every generation)."""
    embeddings = embeddings.astype(jnp.float32)
    G, N, M, D = embeddings.shape
    NM = N * M
    emb3d = embeddings.reshape(G, NM, D)     # wrapper-side reshape: pure layout plumbing
    w_arr = jnp.asarray(w, jnp.float32).reshape(1)
    b_arr = jnp.asarray(b, jnp.float32).reshape(1)

    kernel = functools.partial(_ge2e_loss_kernel, N, M)
    out = pl.pallas_call(
        kernel,
        grid=(G,),
        out_shape=jax.ShapeDtypeStruct((G, 1), jnp.float32),
        in_specs=[
            # w, b: un-blocked scalar params in SMEM (read-only each step)
            pl.BlockSpec(memory_space=pltpu.MemorySpace.SMEM),
            pl.BlockSpec(memory_space=pltpu.MemorySpace.SMEM),
            # one group's (N*M, D) slab per grid step -> auto double-buffered VMEM DMA
            pl.BlockSpec((1, NM, D), lambda g: (g, 0, 0)),
        ],
        # per-group scalar loss through a blocked SMEM output (no lane-sparse VMEM store)
        out_specs=pl.BlockSpec((1, 1), lambda g: (g, 0),
                               memory_space=pltpu.MemorySpace.SMEM),
        compiler_params=pltpu.CompilerParams(
            dimension_semantics=("parallel",)),
    )(w_arr, b_arr, emb3d)
    return out[:, 0]


def ge2e_loss(embeddings, w=10.0, b=-5.0):
    """embeddings: (N_speakers, M_utterances, D) -> scalar GE2E loss (matches the module)."""
    return ge2e_loss_batched(embeddings[None], w, b)[0]


def ge2e_loss_reference(embeddings, w=10.0, b=-5.0):
    """Plain-JAX reference mirroring the PyTorch forward exactly."""
    emb = embeddings.astype(jnp.float32)
    N, M, D = emb.shape
    sum_c = jnp.sum(emb, axis=1)
    centroids = sum_c / M
    utt_cent = (sum_c[:, None, :] - emb) / (M - 1)

    def cos(a, b_):
        na = jnp.maximum(jnp.linalg.norm(a, axis=-1), COS_EPS)
        nb = jnp.maximum(jnp.linalg.norm(b_, axis=-1), COS_EPS)
        return jnp.sum(a * b_, axis=-1) / (na * nb)

    cos_same = cos(emb, utt_cent)                                     # (N, M)
    cos_diff = cos(emb[:, :, None, :], centroids[None, None, :, :])   # (N, M, N)
    diag = jnp.eye(N, dtype=bool)[:, None, :]
    cos_diff = jnp.where(diag, cos_same[:, :, None], cos_diff) + SMALL_ERR
    sim = w * cos_diff + b
    pos = jnp.sum(jnp.where(diag, sim, 0.0), axis=2)
    neg = jnp.log(jnp.sum(jnp.exp(sim), axis=2) + SMALL_ERR)
    return jnp.sum(-(pos - neg))


if __name__ == "__main__":
    # Deterministic parameters (as in the module __init__): w = 10.0, b = -5.0.
    W_INIT, B_INIT = 10.0, -5.0

    key = jax.random.PRNGKey(0)
    G_GROUPS, N_SPEAKERS, M_UTTER, D_EMB = 3, 4, 6, 32
    emb_batched = jax.random.normal(
        key, (G_GROUPS, N_SPEAKERS, M_UTTER, D_EMB), dtype=jnp.float32)

    # single group (the PyTorch module's forward signature)
    loss = jax.block_until_ready(ge2e_loss(emb_batched[0], W_INIT, B_INIT))
    ref = jax.block_until_ready(ge2e_loss_reference(emb_batched[0], W_INIT, B_INIT))
    assert jnp.allclose(loss, ref, rtol=1e-4, atol=1e-4), (loss, ref)

    # batched groups behind the parallel grid axis
    losses = jax.block_until_ready(ge2e_loss_batched(emb_batched, W_INIT, B_INIT))
    refs = jnp.stack([ge2e_loss_reference(emb_batched[g], W_INIT, B_INIT)
                      for g in range(G_GROUPS)])
    assert jnp.allclose(losses, refs, rtol=1e-4, atol=1e-4), (losses, refs)

    print("KERNEL_OK")
</pallas_src>

<mosaic_0001>
module attributes {stable_mosaic.version = 11 : i64} {
  func.func @_ge2e_loss_kernel(%arg0: i32, %arg1: memref<1xf32, #tpu.memory_space<smem>>, %arg2: memref<1xf32, #tpu.memory_space<smem>>, %arg3: memref<1x24x32xf32, #tpu.memory_space<vmem>>, %arg4: memref<1x1xf32, #tpu.memory_space<smem>>) attributes {dimension_semantics = [#tpu.dimension_semantics<parallel>], iteration_bounds = array<i64: 1>, scalar_prefetch = 0 : i64, scratch_operands = 0 : i64, tpu.core_type = #tpu.core_type<tc>, window_params = [{transform_indices = @transform_0, window_bounds = array<i64: 1>}, {transform_indices = @transform_1, window_bounds = array<i64: 1>}, {transform_indices = @transform_2, window_bounds = array<i64: 1, 24, 32>}, {transform_indices = @transform_3, window_bounds = array<i64: 1, 1>}]} {
    %c0 = arith.constant 0 : index
    %c0_0 = arith.constant 0 : index
    %c0_1 = arith.constant 0 : index
    %0 = vector.load %arg3[%c0, %c0_0, %c0_1] : memref<1x24x32xf32, #tpu.memory_space<vmem>>, vector<1x24x32xf32>
    %1 = vector.shape_cast %0 : vector<1x24x32xf32> to vector<24x32xf32>
    %c0_2 = arith.constant 0 : index
    %2 = memref.load %arg1[%c0_2] : memref<1xf32, #tpu.memory_space<smem>>
    %c0_3 = arith.constant 0 : index
    %3 = memref.load %arg2[%c0_3] : memref<1xf32, #tpu.memory_space<smem>>
    %4 = tpu.iota {dimensions = array<i32: 0>} : vector<24x4xi32>
    %5 = tpu.iota {dimensions = array<i32: 1>} : vector<24x4xi32>
    %c6_i32 = arith.constant 6 : i32
    %6 = vector.broadcast %c6_i32 : i32 to vector<24x4xi32>
    %7 = arith.muli %5, %6 : vector<24x4xi32>
    %8 = arith.subi %4, %7 : vector<24x4xi32>
    %c0_i32 = arith.constant 0 : i32
    %9 = vector.broadcast %c0_i32 : i32 to vector<24x4xi32>
    %10 = arith.cmpi sge, %8, %9 : vector<24x4xi32>
    %c6_i32_4 = arith.constant 6 : i32
    %11 = vector.broadcast %c6_i32_4 : i32 to vector<24x4xi32>
    %12 = arith.cmpi slt, %8, %11 : vector<24x4xi32>
    %13 = arith.andi %10, %12 : vector<24x4xi1>
    %14 = tpu.iota {dimensions = array<i32: 0>} : vector<4x24xi32>
    %15 = tpu.iota {dimensions = array<i32: 1>} : vector<4x24xi32>
    %c6_i32_5 = arith.constant 6 : i32
    %16 = vector.broadcast %c6_i32_5 : i32 to vector<4x24xi32>
    %17 = arith.muli %14, %16 : vector<4x24xi32>
    %18 = arith.subi %15, %17 : vector<4x24xi32>
    %c0_i32_6 = arith.constant 0 : i32
    %19 = vector.broadcast %c0_i32_6 : i32 to vector<4x24xi32>
    %20 = arith.cmpi sge, %18, %19 : vector<4x24xi32>
    %c6_i32_7 = arith.constant 6 : i32
    %21 = vector.broadcast %c6_i32_7 : i32 to vector<4x24xi32>
    %22 = arith.cmpi slt, %18, %21 : vector<4x24xi32>
    %23 = arith.andi %20, %22 : vector<4x24xi1>
    %24 = arith.extui %23 : vector<4x24xi1> to vector<4x24xi32>
    %25 = arith.sitofp %24 : vector<4x24xi32> to vector<4x24xf32>
    %cst = arith.constant dense<0.000000e+00> : vector<4x32xf32>
    %26 = tpu.matmul %25, %1, %cst {dimension_numbers = #tpu.dot_dimension_numbers<[1], [0], [0], [1], [0, 0, 1, 1], [], []>} : vector<4x24xf32>, vector<24x32xf32>, vector<4x32xf32> -> vector<4x32xf32>
    %cst_8 = arith.constant dense<0.000000e+00> : vector<24x4xf32>
    %27 = tpu.matmul %1, %26, %cst_8 {dimension_numbers = #tpu.dot_dimension_numbers<[1], [1], [0], [0], [0, 0, 1, 0], [], []>} : vector<24x32xf32>, vector<4x32xf32>, vector<24x4xf32> -> vector<24x4xf32>
    %28 = arith.mulf %1, %1 : vector<24x32xf32>
    %cst_9 = arith.constant dense<0.000000e+00> : vector<24xf32>
    %29 = vector.multi_reduction <add>, %28, %cst_9 [1] : vector<24x32xf32> to vector<24xf32>
    %30 = vector.shape_cast %29 : vector<24xf32> to vector<24x1xf32>
    %31 = arith.mulf %26, %26 : vector<4x32xf32>
    %cst_10 = arith.constant dense<0.000000e+00> : vector<4xf32>
    %32 = vector.multi_reduction <add>, %31, %cst_10 [1] : vector<4x32xf32> to vector<4xf32>
    %cst_11 = arith.constant 0.000000e+00 : f32
    %33 = vector.broadcast %cst_11 : f32 to vector<24x4xf32>
    %34 = arith.select %13, %27, %33 : vector<24x4xi1>, vector<24x4xf32>
    %cst_12 = arith.constant dense<0.000000e+00> : vector<24xf32>
    %35 = vector.multi_reduction <add>, %34, %cst_12 [1] : vector<24x4xf32> to vector<24xf32>
    %36 = vector.shape_cast %35 : vector<24xf32> to vector<24x1xf32>
    %37 = vector.shape_cast %32 : vector<4xf32> to vector<1x4xf32>
    %cst_13 = arith.constant 0.000000e+00 : f32
    %38 = vector.shape_cast %37 : vector<1x4xf32> to vector<1x4xf32>
    %39 = vector.broadcast %38 : vector<1x4xf32> to vector<24x4xf32>
    %40 = vector.broadcast %cst_13 : f32 to vector<24x4xf32>
    %41 = arith.select %13, %39, %40 : vector<24x4xi1>, vector<24x4xf32>
    %cst_14 = arith.constant dense<0.000000e+00> : vector<24xf32>
    %42 = vector.multi_reduction <add>, %41, %cst_14 [1] : vector<24x4xf32> to vector<24xf32>
    %43 = vector.shape_cast %42 : vector<24xf32> to vector<24x1xf32>
    %44 = arith.subf %36, %30 : vector<24x1xf32>
    %cst_15 = arith.constant 2.000000e-01 : f32
    %45 = vector.broadcast %cst_15 : f32 to vector<24x1xf32>
    %46 = arith.mulf %44, %45 : vector<24x1xf32>
    %cst_16 = arith.constant 2.000000e+00 : f32
    %47 = vector.broadcast %cst_16 : f32 to vector<24x1xf32>
    %48 = arith.mulf %47, %36 : vector<24x1xf32>
    %49 = arith.subf %43, %48 : vector<24x1xf32>
    %50 = arith.addf %49, %30 : vector<24x1xf32>
    %cst_17 = arith.constant 4.000000e-02 : f32
    %51 = vector.broadcast %cst_17 : f32 to vector<24x1xf32>
    %52 = arith.mulf %50, %51 : vector<24x1xf32>
    %cst_18 = arith.constant 1.000000e-16 : f32
    %53 = vector.broadcast %cst_18 : f32 to vector<24x1xf32>
    %54 = arith.maximumf %30, %53 : vector<24x1xf32>
    %55 = math.rsqrt %54 : vector<24x1xf32>
    %cst_19 = arith.constant 1.000000e-16 : f32
    %56 = vector.broadcast %cst_19 : f32 to vector<24x1xf32>
    %57 = arith.maximumf %52, %56 : vector<24x1xf32>
    %58 = math.rsqrt %57 : vector<24x1xf32>
    %cst_20 = arith.constant 3.600000e-15 : f32
    %59 = vector.broadcast %cst_20 : f32 to vector<4xf32>
    %60 = arith.maximumf %32, %59 : vector<4xf32>
    %61 = math.rsqrt %60 : vector<4xf32>
    %62 = arith.mulf %46, %55 : vector<24x1xf32>
    %63 = arith.mulf %62, %58 : vector<24x1xf32>
    %64 = vector.broadcast %55 : vector<24x1xf32> to vector<24x4xf32>
    %65 = arith.mulf %27, %64 : vector<24x4xf32>
    %66 = vector.shape_cast %61 : vector<4xf32> to vector<1x4xf32>
    %67 = vector.broadcast %66 : vector<1x4xf32> to vector<24x4xf32>
    %68 = arith.mulf %65, %67 : vector<24x4xf32>
    %69 = vector.shape_cast %63 : vector<24x1xf32> to vector<24x1xf32>
    %70 = vector.broadcast %69 : vector<24x1xf32> to vector<24x4xf32>
    %71 = arith.select %13, %70, %68 : vector<24x4xi1>, vector<24x4xf32>
    %cst_21 = arith.constant 9.99999997E-7 : f32
    %72 = vector.broadcast %cst_21 : f32 to vector<24x4xf32>
    %73 = arith.addf %71, %72 : vector<24x4xf32>
    %74 = vector.broadcast %2 : f32 to vector<24x4xf32>
    %75 = arith.mulf %74, %73 : vector<24x4xf32>
    %76 = vector.broadcast %3 : f32 to vector<24x4xf32>
    %77 = arith.addf %75, %76 : vector<24x4xf32>
    %cst_22 = arith.constant 9.99999997E-7 : f32
    %78 = vector.broadcast %cst_22 : f32 to vector<24x1xf32>
    %79 = arith.addf %63, %78 : vector<24x1xf32>
    %80 = vector.broadcast %2 : f32 to vector<24x1xf32>
    %81 = arith.mulf %80, %79 : vector<24x1xf32>
    %82 = vector.broadcast %3 : f32 to vector<24x1xf32>
    %83 = arith.addf %81, %82 : vector<24x1xf32>
    %cst_23 = arith.constant dense<0xFF800000> : vector<24xf32>
    %84 = vector.multi_reduction <maximumf>, %77, %cst_23 [1] : vector<24x4xf32> to vector<24xf32>
    %85 = vector.shape_cast %84 : vector<24xf32> to vector<24x1xf32>
    %86 = vector.broadcast %85 : vector<24x1xf32> to vector<24x4xf32>
    %87 = arith.subf %77, %86 : vector<24x4xf32>
    %88 = math.exp %87 : vector<24x4xf32>
    %cst_24 = arith.constant dense<0.000000e+00> : vector<24xf32>
    %89 = vector.multi_reduction <add>, %88, %cst_24 [1] : vector<24x4xf32> to vector<24xf32>
    %90 = vector.shape_cast %89 : vector<24xf32> to vector<24x1xf32>
    %cst_25 = arith.constant 0.000000e+00 : f32
    %91 = vector.broadcast %cst_25 : f32 to vector<24x1xf32>
    %92 = arith.subf %91, %85 : vector<24x1xf32>
    %93 = math.exp %92 : vector<24x1xf32>
    %cst_26 = arith.constant 9.99999997E-7 : f32
    %94 = vector.broadcast %cst_26 : f32 to vector<24x1xf32>
    %95 = arith.mulf %94, %93 : vector<24x1xf32>
    %96 = arith.addf %90, %95 : vector<24x1xf32>
    %97 = math.log %96 : vector<24x1xf32>
    %98 = arith.addf %85, %97 : vector<24x1xf32>
    %99 = arith.subf %98, %83 : vector<24x1xf32>
    %100 = vector.shape_cast %99 : vector<24x1xf32> to vector<1x24x1xf32>
    %cst_27 = arith.constant dense<0.000000e+00> : vector<1xf32>
    %101 = vector.multi_reduction <add>, %100, %cst_27 [1, 2] : vector<1x24x1xf32> to vector<1xf32>
    %102 = vector.shape_cast %101 : vector<1xf32> to vector<1x1x1xf32>
    %103 = vector.extract %102[0, 0, 0] : f32 from vector<1x1x1xf32>
    %c0_28 = arith.constant 0 : index
    %c0_29 = arith.constant 0 : index
    %104 = memref.load %arg4[%c0_28, %c0_29] : memref<1x1xf32, #tpu.memory_space<smem>>
    memref.store %103, %arg4[%c0_28, %c0_29] : memref<1x1xf32, #tpu.memory_space<smem>>
    return
  }
  func.func @transform_0(%arg0: i32) -> i32 {
    %c0_i32 = arith.constant 0 : i32
    %c0_i32_0 = arith.constant 0 : i32
    return %c0_i32 : i32
  }
  func.func @transform_1(%arg0: i32) -> i32 {
    %c0_i32 = arith.constant 0 : i32
    %c0_i32_0 = arith.constant 0 : i32
    return %c0_i32 : i32
  }
  func.func @transform_2(%arg0: i32) -> (i32, i32, i32) {
    %c0_i32 = arith.constant 0 : i32
    %c0_i32_0 = arith.constant 0 : i32
    %c0_i32_1 = arith.constant 0 : i32
    return %arg0, %c0_i32, %c0_i32_0 : i32, i32, i32
  }
  func.func @transform_3(%arg0: i32) -> (i32, i32) {
    %c0_i32 = arith.constant 0 : i32
    %c0_i32_0 = arith.constant 0 : i32
    return %arg0, %c0_i32 : i32, i32
  }
}

</mosaic_0001>

<bundles_post_ra>
// kernel: tpu_custom_call.1
= control target key start
LH: loop header
LB: loop body
LE: loop exit
PB: predicated region body
PF: predicated region fallthrough
CT: control target
= control target key end

     0   :  { %10 = vsyncpa [#allocation5], 0  ;;  %s717_s0 = inlined_call_operand.<no memory space> [shape: f32[1], index: 0, kind: input, shape index: {}]   ;;  %s718_s1 = inlined_call_operand.<no memory space> [shape: f32[1], index: 1, kind: input, shape index: {}]   ;;  %s719_s2 = inlined_call_operand.hbm [shape: f32[1,24,32], index: 2, kind: input, shape index: {}]   ;;  %s720_s3 = inlined_call_operand.hbm [shape: f32[1,1], index: 3, kind: output, shape index: {}]  }
   0x1   :  { %11 = vsyncpa [#allocation6], 0  ;;  %s567_s12 = smov [#allocation4]   ;;  %s531_s16 = scalar_lea.hbm %s719_s2, 384 }
   0x2   :  { %s21_s13 = sshll.u32 %s567_s12, 4  ;;  %p532_p0 = scmp.ne.s32.totalorder %s719_s2, %s531_s16  ;;  %s22_s13 = int_to_ptr.vmem [resolvable:$true] %s21_s13 }
   0x3   :  { %p535_p1 = scmp.lt.u32.totalorder %s531_s16, %s719_s2 }
   0x5   :  { %p537_p2 = pnand %p535_p1, %p532_p0 }
   0x7   :  { %540 = shalt.err (!%p537_p2)
}
   0x8   :  { %s541_s21 = scalar_lea.vmem %s22_s13, 384  ;;  %p546_p4 = scmp.lt.s32.totalorder %s22_s13, %s22_s13 }
   0x9   :  { %p542_p3 = scmp.ne.s32.totalorder %s22_s13, %s541_s21  ;;  %p547_p5 = scmp.lt.s32.totalorder %s541_s21, %s541_s21 }
   0xb   :  { %p548_p6 = por %p547_p5, %p546_p4 }
   0xd   :  { %p549_p7 = pnand %p548_p6, %p542_p3 }
   0xf   :  { %552 = shalt.err (!%p549_p7)
}
  0x10   :  { %s568_s22 = smov 128   ;;  %s569_s23 = smov 8  }
  0x11   :  { %27 = dma.hbm_to_vmem [thread:$0]  %s719_s2, 384, %s22_s13, [#allocation5], %s568_s22, %s568_s22, %s569_s23  }
  0x12   :  { %563 = dma.done.wait [#allocation5], 384  }
  0x13   :  { %564 = vsyncadd [#allocation5], 4294966912  ;;  %v36_v0 = vlaneseq  ;;  %v570_v1 = vmov 0.0|0.0   ;;  %vm571_vm0 = vmmov 0   ;;  %v572_v2 = vmov 0.0   ;;  %v31_v7 = vld [vmem:[#allocation4] sm:$0xff] }
  0x14   :  { %487 = vmatprep.subr.bf16.mxu0 %v570_v1  ;;  %473 = vmatprep.mubr.msk.f32.mxu0 %vm571_vm0, %v572_v2  ;;  %v32_v8 = vld [vmem:[#allocation4 + $0x8] sm:$0xff]  ;;  %v611_v10 = vld [vmem:[#allocation4 + $0x10] sm:$0xff]  ;;  %vm62_vm4 = vcmask 195584   ;;  %vm136_vm5 = vcmask 261120   ;;  %vm242_vm6 = vcmask 257024   ;;  %v229_v17 = vmul.f32 %v31_v7, %v31_v7  ;;  %s553_s30 = scalar_lea.hbm %s720_s3, 16 }
  0x15   :  { %v607_v3 = vshrl.u32 %v36_v0, 7  ;;  %v41_v4 = vand.u32 127, %v36_v0  ;;  %476 = vmatprep.subr.mxu1 %v572_v2  ;;  %478 = vmatprep.mubr.msk.f32.mxu1 %vm571_vm0, %v572_v2  ;;  %v488_v9 = vpack.c.bf16 %v32_v8, %v31_v7  ;;  %v230_v12 = vmul.f32 %v32_v8, %v32_v8  ;;  %p554_p8 = scmp.ne.s32.totalorder %s720_s3, %s553_s30  ;;  %p557_p9 = scmp.lt.u32.totalorder %s553_s30, %s720_s3 }
  0x16   :  { %v232_v19 = vsel %vm136_vm5, %v229_v17, 0.0  ;;  %vm249_vm13 = vcmask 31744   ;;  %v231_v60 = vmul.f32 %v611_v10, %v611_v10 }
  0x17   :  { %v55_v5 = vmul.u32 6, %v607_v3  ;;  %489 = vmatpush3.bf16.msra.mxu0 %v488_v9  ;;  %v235_v13 = vsel %vm136_vm5, %v230_v12, 0.0  ;;  %v38_v20 = vadd.s32 8, %v607_v3  ;;  %v42_v21 = vmul.u32 6, %v41_v4  ;;  %p559_p10 = pnand %p557_p9, %p554_p8 }
  0x18   :  { %471 = vmatprep.subr.mxu0 %v572_v2  ;;  %236 = vadd.xlane.f32.xlu1 %v235_v13  ;;  %v262_v24 = vsub.s32 %v41_v4, %v607_v3  ;;  %v39_v40 = vadd.s32 16, %v607_v3  ;;  %v238_v0 = vsel %vm136_vm5, %v231_v60, 0.0 }
  0x19   :  { %v56_v6 = vsub.s32 %v41_v4, %v55_v5  ;;  %v44_v22 = vsub.s32 %v38_v20, %v42_v21  ;;  %v43_v23 = vsub.s32 %v607_v3, %v42_v21 }
  0x1a   :  { %v45_v41 = vsub.s32 %v39_v40, %v42_v21 }
  0x1b   :  { %vm57_vm1 = vcmp.ge.s32.totalorder %v56_v6, 0  ;;  %vm58_vm2 = vcmp.lt.s32.totalorder %v56_v6, 6  ;;  %472 = vmatpush3.msra.mxu0 %v611_v10  ;;  %vm47_vm7 = vcmp.ge.s32.totalorder %v44_v22, 0  ;;  %vm50_vm8 = vcmp.lt.s32.totalorder %v44_v22, 6 }
  0x1c   :  { %vm59_vm3 = vmand %vm57_vm1, %vm58_vm2  ;;  %vm46_vm9 = vcmp.ge.s32.totalorder %v43_v23, 0  ;;  %vm49_vm10 = vcmp.lt.s32.totalorder %v43_v23, 6  ;;  %vm48_vm14 = vcmp.ge.s32.totalorder %v45_v41, 0  ;;  %vm51_vm15 = vcmp.lt.s32.totalorder %v45_v41, 6 }
  0x1d   :  { %v453_v11 = vsel %vm59_vm3, 1.0, %v572_v2  ;;  %vm626_vm11 = vmand %vm47_vm7, %vm50_vm8  ;;  %vm422_vm1 = vcmask 7168  }
  0x1e   :  { %474 = vmatmul.mubr.msk.f32.vlgmr.msra.gmra.mrb[0].mxu0 %vm62_vm4, %v453_v11  ;;  %vm630_vm12 = vmand %vm46_vm9, %vm49_vm10 }
  0xa5   :  { %v645_v38 = vpop.xlane.xlu1 %236 }
  0xa6   :  { %v308_v39 = vmax.f32 %v645_v38, 1e-16 }
  0xf1   :  { %v132_v14 = vpop.f32.mrb[0].mxu0 }
  0xf2   :  { %v475_v15 = vpop.f32.mrb[1].mxu0  ;;  %477 = vmatpush3.xpose.msk.msra.mxu1 %vm136_vm5, %v132_v14  ;;  %v241_v16 = vmul.f32 %v132_v14, %v132_v14 }
  0xf4   :  { %v243_v18 = vsel %vm242_vm6, %v241_v16, 0.0 }
  0xf5   :  { %244 = vadd.xlane.f32.xlu0 %v243_v18  ;;  %479 = vmatmul.mubr.msk.f32.vlgmr.msra.gmra.mrb[0].mxu1 %vm136_vm5, %v31_v7 }
  0xf6   :  { %481 = vmatprep.mubr.msk.f32.mxu1 %vm571_vm0, %v572_v2 }
  0xf9   :  { %482 = vmatmul.mubr.msk.f32.gmra.mrb[2].mxu1 %vm136_vm5, %v32_v8  ;;  %233 = vadd.xlane.f32.xlu0 %v232_v19 }
  0xfa   :  { %484 = vmatprep.mubr.msk.f32.mxu1 %vm571_vm0, %v572_v2  ;;  %vm649_vm0 = vmand %vm48_vm14, %vm51_vm15 }
  0xfd   :  { %485 = vmatmul.mubr.msk.f32.gmra.mrb[4].mxu1 %vm136_vm5, %v611_v10 }
 0x182   :  { %v245_v26 = vpop.xlane.xlu0 %244 }
 0x183   :  { %v263_v28 = vrot.slane %v245_v26, %v262_v24  ;;  %v319_v29 = vmax.f32 %v245_v26, 3.6e-15 }
 0x185   :  { %499 = vrsqrt.f32 %v319_v29  ;;  %v278_v30 = vsel %vm626_vm11, %v263_v28, 0.0  ;;  %v277_v31 = vsel %vm630_vm12, %v263_v28, 0.0  ;;  %v279_v51 = vsel %vm649_vm0, %v263_v28, 0.0 }
 0x186   :  { %v283_v32 = vsel %vm249_vm13, %v278_v30, 0.0  ;;  %v280_v33 = vsel %vm249_vm13, %v277_v31, 0.0  ;;  %v642_v36 = vpop.xlane.xlu0 %233  ;;  %v286_v56 = vsel %vm249_vm13, %v279_v51, 0.0 }
 0x187   :  { %284 = vadd.xlane.f32.xlu1 %v283_v32  ;;  %281 = vadd.xlane.f32.xlu0 %v280_v33  ;;  %v307_v37 = vmax.f32 %v642_v36, 1e-16 }
 0x189   :  { %501 = vrsqrt.f32 %v307_v37 }
 0x18a   :  { %503 = vrsqrt.f32 %v308_v39 }
 0x18f   :  { %v500_v34 = vpop.eup %499 }
 0x190   :  { %v640_v35 = vrot.slane %v500_v34, %v262_v24  ;;  %v351_v34 = vstv %s717_s0 }
 0x193   :  { %v502_v42 = vpop.eup %501 }
 0x194   :  { %v504_v48 = vpop.eup %503 }
 0x1c8   :  { %v215_v43 = vpop.f32.mrb[0].mxu1 }
 0x1c9   :  { %v327_v45 = vmul.f32 %v502_v42, %v215_v43  ;;  %v480_v46 = vpop.f32.mrb[1].mxu1  ;;  %v246_v47 = vsel %vm630_vm12, %v215_v43, 0.0 }
 0x1ca   :  { %v250_v49 = vsel %vm249_vm13, %v246_v47, 0.0 }
 0x1cb   :  { %v342_v50 = vmul.f32 %v640_v35, %v327_v45  ;;  %251 = vadd.xlane.f32.xlu0 %v250_v49 }
 0x1cc   :  { %v220_v52 = vpop.f32.mrb[2].mxu1 }
 0x1cd   :  { %v328_v53 = vmul.f32 %v504_v48, %v220_v52  ;;  %v483_v54 = vpop.f32.mrb[3].mxu1  ;;  %v247_v55 = vsel %vm626_vm11, %v220_v52, 0.0 }
 0x1ce   :  { %v253_v57 = vsel %vm249_vm13, %v247_v55, 0.0 }
 0x1cf   :  { %v664_v58 = vmul.f32 %v640_v35, %v328_v53  ;;  %287 = vadd.xlane.f32.xlu0 %v286_v56  ;;  %254 = vadd.xlane.f32.xlu1 %v253_v57 }
 0x1d0   :  { %v225_v59 = vpop.f32.mrb[4].mxu1 }
 0x1d1   :  { %v486_v61 = vpop.f32.mrb[5].mxu1  ;;  %v248_v62 = vsel %vm649_vm0, %v225_v59, 0.0 }
 0x1d2   :  { %v256_v63 = vsel %vm249_vm13, %v248_v62, 0.0 }
 0x1d3   :  { %257 = vadd.xlane.f32.xlu1 %v256_v63 }
 0x1d7   :  { %239 = vadd.xlane.f32.xlu1 %v238_v0 }
 0x214   :  { %v282_v1 = vpop.xlane.xlu0 %281  ;;  %v285_v2 = vpop.xlane.xlu1 %284 }
 0x258   :  { %v252_v3 = vpop.xlane.xlu0 %251 }
 0x259   :  { %v295_v4 = vmul.f32 2.0, %v252_v3  ;;  %v289_v18 = vsub.f32 %v252_v3, %v642_v36 }
 0x25b   :  { %v298_v5 = vsub.f32 %v282_v1, %v295_v4  ;;  %v292_v24 = vmul.f32 0.2, %v289_v18 }
 0x25c   :  { %v255_v6 = vpop.xlane.xlu1 %254  ;;  %v288_v15 = vpop.xlane.xlu0 %287 }
 0x25d   :  { %v301_v7 = vadd.f32 %v298_v5, %v642_v36  ;;  %v296_v8 = vmul.f32 2.0, %v255_v6  ;;  %v290_v26 = vsub.f32 %v255_v6, %v645_v38  ;;  %v321_v29 = vmul.f32 %v502_v42, %v292_v24 }
 0x25f   :  { %v304_v9 = vmul.f32 0.04, %v301_v7  ;;  %v299_v10 = vsub.f32 %v285_v2, %v296_v8  ;;  %v293_v30 = vmul.f32 0.2, %v290_v26 }
 0x260   :  { %v258_v11 = vpop.xlane.xlu1 %257 }
 0x261   :  { %v313_v12 = vmax.f32 %v304_v9, 1e-16  ;;  %v302_v13 = vadd.f32 %v299_v10, %v645_v38  ;;  %v297_v14 = vmul.f32 2.0, %v258_v11  ;;  %v322_v37 = vmul.f32 %v504_v48, %v293_v30 }
 0x262   :  { %v355_v38 = vstv %s718_s1 }
 0x263   :  { %505 = vrsqrt.f32 %v313_v12  ;;  %v305_v16 = vmul.f32 0.04, %v302_v13  ;;  %v300_v17 = vsub.f32 %v288_v15, %v297_v14 }
 0x264   :  { %v240_v19 = vpop.xlane.xlu1 %239 }
 0x265   :  { %v314_v20 = vmax.f32 %v305_v16, 1e-16  ;;  %v303_v21 = vadd.f32 %v300_v17, %v240_v19  ;;  %v309_v22 = vmax.f32 %v240_v19, 1e-16  ;;  %v291_v33 = vsub.f32 %v258_v11, %v240_v19 }
 0x267   :  { %507 = vrsqrt.f32 %v314_v20  ;;  %v306_v23 = vmul.f32 0.04, %v303_v21  ;;  %v294_v46 = vmul.f32 0.2, %v291_v33 }
 0x268   :  { %509 = vrsqrt.f32 %v309_v22 }
 0x269   :  { %v315_v28 = vmax.f32 %v306_v23, 1e-16 }
 0x26b   :  { %511 = vrsqrt.f32 %v315_v28 }
 0x26d   :  { %v506_v31 = vpop.eup %505 }
 0x26e   :  { %v324_v32 = vmul.f32 %v506_v31, %v321_v29 }
 0x270   :  { %v359_v36 = vadd.f32 1e-06, %v324_v32  ;;  %v345_v39 = vsel %vm630_vm12, %v324_v32, %v342_v50 }
 0x271   :  { %v508_v40 = vpop.eup %507  ;;  %v348_v41 = vadd.f32 1e-06, %v345_v39 }
 0x272   :  { %v510_v42 = vpop.eup %509  ;;  %v362_v43 = vmul.f32 %v359_v36, %v351_v34  ;;  %v325_v45 = vmul.f32 %v508_v40, %v322_v37 }
 0x273   :  { %v352_v47 = vmul.f32 %v351_v34, %v348_v41  ;;  %v329_v49 = vmul.f32 %v510_v42, %v225_v59  ;;  %v323_v52 = vmul.f32 %v510_v42, %v294_v46 }
 0x274   :  { %v360_v51 = vadd.f32 1e-06, %v325_v45  ;;  %v346_v48 = vsel %vm626_vm11, %v325_v45, %v664_v58  ;;  %v687_v27 = vadd.f32 %v362_v43, %v355_v38 }
 0x275   :  { %v512_v50 = vpop.eup %511  ;;  %v356_v53 = vadd.f32 %v355_v38, %v352_v47  ;;  %v349_v54 = vadd.f32 1e-06, %v346_v48  ;;  %v344_v55 = vmul.f32 %v640_v35, %v329_v49 }
 0x276   :  { %v363_v56 = vmul.f32 %v360_v51, %v351_v34  ;;  %v326_v57 = vmul.f32 %v512_v50, %v323_v52 }
 0x277   :  { %v368_v60 = vsel %vm249_vm13, %v356_v53, -inf  ;;  %v353_v61 = vmul.f32 %v351_v34, %v349_v54 }
 0x278   :  { %v361_v62 = vadd.f32 1e-06, %v326_v57  ;;  %369 = vmax.xlane.f32.xlu0 %v368_v60  ;;  %v347_v59 = vsel %vm649_vm0, %v326_v57, %v344_v55  ;;  %v693_v63 = vadd.f32 %v363_v56, %v355_v38 }
 0x279   :  { %v357_v25 = vadd.f32 %v355_v38, %v353_v61  ;;  %v350_v58 = vadd.f32 1e-06, %v347_v59 }
 0x27a   :  { %v364_v0 = vmul.f32 %v361_v62, %v351_v34 }
 0x27b   :  { %v371_v1 = vsel %vm249_vm13, %v357_v25, -inf  ;;  %v354_v2 = vmul.f32 %v351_v34, %v350_v58 }
 0x27c   :  { %372 = vmax.xlane.f32.xlu1 %v371_v1  ;;  %v696_v35 = vadd.f32 %v364_v0, %v355_v38 }
 0x27d   :  { %v358_v3 = vadd.f32 %v355_v38, %v354_v2 }
 0x27f   :  { %v374_v4 = vsel %vm249_vm13, %v358_v3, -inf }
 0x280   :  { %375 = vmax.xlane.f32.xlu0 %v374_v4 }
 0x305   :  { %v370_v5 = vpop.xlane.xlu0 %369 }
 0x306   :  { %v377_v6 = vsub.f32 %v356_v53, %v370_v5  ;;  %v395_v19 = vsub.f32 0.0, %v370_v5 }
 0x308   :  { %v380_v7 = vmul.f32 1.442695, %v377_v6  ;;  %v398_v20 = vmul.f32 1.442695, %v395_v19 }
 0x309   :  { %v373_v44 = vpop.xlane.xlu1 %372 }
 0x30a   :  { %513 = vpow2.f32 %v380_v7  ;;  %v378_v8 = vsub.f32 %v357_v25, %v373_v44  ;;  %v396_v21 = vsub.f32 0.0, %v373_v44 }
 0x30c   :  { %v382_v9 = vmul.f32 1.442695, %v378_v8  ;;  %v400_v22 = vmul.f32 1.442695, %v396_v21 }
 0x30d   :  { %v376_v10 = vpop.xlane.xlu0 %375 }
 0x30e   :  { %515 = vpow2.f32 %v382_v9  ;;  %v379_v11 = vsub.f32 %v358_v3, %v376_v10  ;;  %v397_v23 = vsub.f32 0.0, %v376_v10 }
 0x310   :  { %v384_v12 = vmul.f32 1.442695, %v379_v11  ;;  %v402_v24 = vmul.f32 1.442695, %v397_v23 }
 0x312   :  { %517 = vpow2.f32 %v384_v12 }
 0x313   :  { %519 = vpow2.f32 %v398_v20 }
 0x314   :  { %v514_v13 = vpop.eup %513  ;;  %521 = vpow2.f32 %v400_v22 }
 0x315   :  { %v386_v14 = vsel %vm249_vm13, %v514_v13, 0.0  ;;  %523 = vpow2.f32 %v402_v24 }
 0x316   :  { %387 = vadd.xlane.f32.xlu1 %v386_v14 }
 0x318   :  { %v516_v15 = vpop.eup %515 }
 0x319   :  { %v389_v16 = vsel %vm249_vm13, %v516_v15, 0.0 }
 0x31a   :  { %390 = vadd.xlane.f32.xlu0 %v389_v16 }
 0x31c   :  { %v518_v17 = vpop.eup %517 }
 0x31d   :  { %v392_v18 = vsel %vm249_vm13, %v518_v17, 0.0  ;;  %v520_v26 = vpop.eup %519 }
 0x31e   :  { %393 = vadd.xlane.f32.xlu1 %v392_v18  ;;  %v404_v28 = vmul.f32 1e-06, %v520_v26  ;;  %v522_v29 = vpop.eup %521 }
 0x31f   :  { %v405_v32 = vmul.f32 1e-06, %v522_v29  ;;  %v524_v33 = vpop.eup %523 }
 0x320   :  { %v406_v37 = vmul.f32 1e-06, %v524_v33 }
 0x3a3   :  { %v388_v30 = vpop.xlane.xlu1 %387 }
 0x3a4   :  { %v407_v31 = vadd.f32 %v404_v28, %v388_v30 }
 0x3a6   :  { %525 = vlog2.f32 %v407_v31 }
 0x3a7   :  { %v391_v34 = vpop.xlane.xlu0 %390 }
 0x3a8   :  { %v408_v36 = vadd.f32 %v405_v32, %v391_v34 }
 0x3aa   :  { %527 = vlog2.f32 %v408_v36 }
 0x3ab   :  { %v394_v39 = vpop.xlane.xlu1 %393 }
 0x3ac   :  { %v409_v40 = vadd.f32 %v406_v37, %v394_v39 }
 0x3ae   :  { %529 = vlog2.f32 %v409_v40 }
 0x3b0   :  { %v526_v41 = vpop.eup %525 }
 0x3b1   :  { %v411_v38 = vmul.f32 0.6931472, %v526_v41 }
 0x3b3   :  { %v416_v42 = vadd.f32 %v411_v38, %v370_v5 }
 0x3b4   :  { %v528_v43 = vpop.eup %527 }
 0x3b5   :  { %v413_v45 = vmul.f32 0.6931472, %v528_v43  ;;  %v419_v47 = vsub.f32 %v416_v42, %v687_v27 }
 0x3b7   :  { %v417_v46 = vadd.f32 %v413_v45, %v373_v44  ;;  %v423_v50 = vsel %vm422_vm1, %v419_v47, 0.0 }
 0x3b8   :  { %v530_v49 = vpop.eup %529 }
 0x3b9   :  { %v415_v51 = vmul.f32 0.6931472, %v530_v49  ;;  %v420_v52 = vsub.f32 %v417_v46, %v693_v63 }
 0x3bb   :  { %v418_v48 = vadd.f32 %v415_v51, %v376_v10  ;;  %v424_v53 = vsel %vm422_vm1, %v420_v52, 0.0 }
 0x3bc   :  { %v425_v54 = vadd.f32 %v424_v53, %v423_v50 }
 0x3bd   :  { %v421_v55 = vsub.f32 %v418_v48, %v696_v35 }
 0x3bf   :  { %v426_v56 = vsel %vm422_vm1, %v421_v55, 0.0 }
 0x3c0   :  { %v427_v57 = vadd.f32 %v426_v56, %v425_v54 }
 0x3c2   :  { %428 = vadd.xlane.f32.xlu0 %v427_v57 }
 0x44f   :  { %v429_v60 = vpop.xlane.xlu0 %428 }
 0x450   :  { %v430_v61 = vrot.slane %v429_v60, 4 }
 0x452   :  { %v431_v62 = vadd.f32 %v430_v61, %v429_v60 }
 0x454   :  { %v432_v59 = vrot.slane %v431_v62, 2 }
 0x456   :  { %v433_v25 = vadd.f32 %v432_v59, %v431_v62 }
 0x458   :  { %v434_v27 = vrot.slane %v433_v25, 1 }
 0x45a   :  { %v435_v58 = vadd.f32 %v434_v27, %v433_v25 }
 0x45c   :  { %490 = vpush %v435_v58 }
 0x48d   :  { %s491_s0 = spop %490 }
 0x48e   :  { %438 = sst [smem:[#allocation7]] %s491_s0 }
 0x48f   :  { %562 = shalt.err (!%p559_p10)
}
 0x490   :  { %s573_s8 = smov [#allocation7]  }
 0x491   :  { %446 = dma.smem_to_hbm %s573_s8, 16, %s720_s3, [#allocation6]  }
 0x492   :  { %565 = dma.done.wait [#allocation6], 16  }
 0x493   :  { %566 = vsyncadd [#allocation6], 4294967280 }
 0x494   :  { %450 = sfence }
 0x495   :  { %451 = vsyncpa [#allocation5], 1 }
 0x496   :  { %452 = vsyncpa [#allocation6], 1 }

</bundles_post_ra>
